<compile_context>
chip_gen: v7x
topology: tpu7x:2x2x1
jax: 0.10.0
libtpu: 0.0.40
codegen_flags: <defaults>
</compile_context>

<pallas_src>
import functools

import numpy as np
import jax
import jax.numpy as jnp
from jax import lax
from jax.experimental import pallas as pl
from jax.experimental.pallas import tpu as pltpu


def _feaf_kernel(xq_ref, xk_ref, xv_ref, f_ref, hinv_ref, mask_ref, o_ref, *, m, h, bt):
    """One grid step = `bt` batch elements.

    xq/xk/xv refs : (bt, t, c*h) bf16, native layout (time on sublanes, c*h on lanes,
                    lane index col = d*h + head).
    f_ref         : (2m, t) bf16 forward DFT basis, rows = [cos ; -sin].
    hinv_ref      : (t, 2m) bf16 truncated-irfft basis with 1/d_model^2 scale folded in.
    mask_ref      : (h*m, c*h) f32 block-diagonal head mask: mask[hh*m + y, col] = (col % h == hh).
    o_ref         : (bt, t, c*h) f32 output, native layout (lane-dense on c*h).
    """
    fmat = f_ref[...]          # (2m, t)   bf16
    hmat = hinv_ref[...]       # (t, 2m)   bf16
    mask = mask_ref[...]       # (h*m, ch) f32

    t10 = (((1,), (0,)), ((), ()))     # standard (M,K) x (K,N)
    t11 = (((1,), (1,)), ((), ()))     # A @ B^T (flash-attention style rhs contraction)

    def dot(a, b, dims):
        return lax.dot_general(a, b, dims, preferred_element_type=jnp.float32)

    for bb in range(bt):               # static, tiny unroll (bt is 1..8)
        xq = xq_ref[bb]                # (t, ch) bf16
        xk = xk_ref[bb]
        xv = xv_ref[bb]

        # ---- forward truncated rfft: bf16 x bf16 -> f32 accum, big operand is a plain rhs --
        sq = dot(fmat, xq, t10)        # (2m, ch)   rows [Re ; Im]
        sk = dot(fmat, xk, t10)
        sv = dot(fmat, xv, t10)

        sq_r, sq_i = sq[:m], sq[m:]    # sublane-aligned row split (m multiple of 8 here)
        sk_r, sk_i = sk[:m], sk[m:]
        sv_r, sv_i = sv[:m], sv[m:]

        # ---- block-diagonal head stacks: tile along sublanes, mask on the VPU --------------
        # st[hh*m + y, col] = S[y, col] if col % h == hh else 0
        def head_stack(s):
            return jnp.concatenate([s] * h, axis=0) * mask      # (h*m, ch)

        kst_r, kst_i = head_stack(sk_r), head_stack(sk_i)
        vst_r, vst_i = head_stack(sv_r), head_stack(sv_i)

        # ---- batched per-head QK (complex, no conjugation), all heads in one matmul set ----
        # A[x, hh*m + y] = sum_d Q[hh, d, x] * K[hh, d, y]
        ar = dot(sq_r, kst_r, t11) - dot(sq_i, kst_i, t11)       # (m, h*m)
        ai = dot(sq_r, kst_i, t11) + dot(sq_i, kst_r, t11)

        # ---- complex tanh, overflow-safe; exact divide keeps it sane near the poles --------
        #   with e = exp(-2|x|):
        #   tanh(x+iy) = ( sign(x)*(1-e^2) + i*2e*sin(2y) ) / ( (1+e^2) + 2e*cos(2y) )
        e = jnp.exp(-2.0 * jnp.abs(ar))
        e2 = e * e
        num_r = jnp.where(ar < 0.0, -(1.0 - e2), 1.0 - e2)
        num_i = jnp.sin(2.0 * ai) * (2.0 * e)
        den = (1.0 + e2) + jnp.cos(2.0 * ai) * (2.0 * e)
        inv_den = 1.0 / den            # exact divide (pole-robust), cost is negligible here
        tr = num_r * inv_den           # (m, h*m)
        ti = num_i * inv_den

        # ---- batched A @ V: lands directly back in the native (mode, d*h+head) layout ------
        # R[x, col] = sum_y A[x, head(col)*m + y] * V[y, col]
        rr = dot(tr, vst_r, t10) - dot(ti, vst_i, t10)           # (m, ch)
        ri = dot(tr, vst_i, t10) + dot(ti, vst_r, t10)

        rst = jnp.concatenate([rr, ri], axis=0).astype(jnp.bfloat16)   # (2m, ch)

        # ---- truncated irfft (scale folded into hmat); lane-dense (t, c*h) store -----------
        o_ref[bb] = dot(hmat, rst, t10)                          # (t, ch) f32


@functools.partial(jax.jit, static_argnames=("d_model", "num_modes", "batch_tile"))
def feaf_lowpass(q, k, v, *, d_model, num_modes=16, batch_tile=None):
    """q, k, v: (b, t, c, mw_dim) float32.  Returns (b, t, c, mw_dim) float32."""
    b, t, c, h = q.shape
    m = min(t // 2, num_modes)
    ch = c * h
    scale = 1.0 / d_model / d_model

    # ---- batch tiling: >= 2 grid steps (both v7x TCs busy), and the double-buffered
    # (3 bf16 in + 1 f32 out) slabs stay under ~24 MiB so the 32 MiB scoped-VMEM default
    # holds on v5e / v6e / v7x without compiler-param overrides.
    if batch_tile is None:
        bytes_per_b = t * ch * (3 * 2 + 4) * 2      # (3 bf16 + 1 f32) x double buffer
        bt = 1
        for cand in range(min(8, b), 0, -1):
            if b % cand == 0 and (b // cand) >= 2 and cand * bytes_per_b < 24 * 1024 * 1024:
                bt = cand
                break
    else:
        bt = int(batch_tile)
        assert b % bt == 0

    # ---- inputs: native layout, free reshape; bf16 operands for the MXU (f32 accumulation
    # stays inside the kernel).  NOTE: keeping c*h a multiple of 128 (pad c upstream if a
    # real config is narrower) gives unmasked lane-dense loads/stores.
    xq = q.reshape(b, t, ch).astype(jnp.bfloat16)
    xk = k.reshape(b, t, ch).astype(jnp.bfloat16)
    xv = v.reshape(b, t, ch).astype(jnp.bfloat16)

    # ---- compile-time constants (numpy at trace time; jit folds them into the executable) --
    n_idx = np.arange(t, dtype=np.float64)[:, None]
    k_idx = np.arange(m, dtype=np.float64)[None, :]
    ang = 2.0 * np.pi * n_idx * k_idx / t                         # (t, m)

    # Forward basis (2m, t):  X[k] = sum_n x[n] * (cos - i*sin)
    fmat = np.concatenate([np.cos(ang).T, -np.sin(ang).T], axis=0).astype(np.float32)

    # Truncated-irfft basis (t, 2m) with the 1/d_model^2 scale folded in.  The Nyquist bin is
    # never kept (m <= t//2), so weight 2 on every k >= 1 is valid; DC imag column is 0.
    w = np.where(np.arange(m) == 0, 1.0, 2.0)[None, :]
    hmat = (np.concatenate([w * np.cos(ang), -w * np.sin(ang)], axis=1) * (scale / t)
            ).astype(np.float32)

    # Block-diagonal head mask (h*m, ch): selects, for stack-row block hh, the lanes whose
    # interleaved column index d*h + head has head == hh.
    rows_head = np.repeat(np.arange(h), m)                        # (h*m,)
    cols_head = np.tile(np.arange(h), c)                          # (ch,)  == col % h
    mask = (rows_head[:, None] == cols_head[None, :]).astype(np.float32)

    fmat_d = jnp.asarray(fmat, dtype=jnp.bfloat16)
    hmat_d = jnp.asarray(hmat, dtype=jnp.bfloat16)
    mask_d = jnp.asarray(mask, dtype=jnp.float32)

    out = pl.pallas_call(
        functools.partial(_feaf_kernel, m=m, h=h, bt=bt),
        out_shape=jax.ShapeDtypeStruct((b, t, ch), jnp.float32),
        grid_spec=pltpu.PrefetchScalarGridSpec(
            num_scalar_prefetch=0,
            grid=(b // bt,),
            in_specs=[
                pl.BlockSpec((bt, t, ch), lambda i: (i, 0, 0)),
                pl.BlockSpec((bt, t, ch), lambda i: (i, 0, 0)),
                pl.BlockSpec((bt, t, ch), lambda i: (i, 0, 0)),
                pl.BlockSpec((2 * m, t), lambda i: (0, 0)),       # constant blocks: fetched once
                pl.BlockSpec((t, 2 * m), lambda i: (0, 0)),
                pl.BlockSpec((h * m, ch), lambda i: (0, 0)),
            ],
            out_specs=pl.BlockSpec((bt, t, ch), lambda i: (i, 0, 0)),
        ),
        compiler_params=pltpu.CompilerParams(dimension_semantics=("parallel",)),
    )(xq, xk, xv, fmat_d, hmat_d, mask_d)

    return out.reshape(b, t, c, h)     # free reshape back to (b, t, c, mw_dim)


def feaf_lowpass_ref(q, k, v, *, d_model, num_modes=16):
    """Pure-JAX reference reproducing the PyTorch forward with jnp.fft."""
    b, t, c, h = q.shape
    m = min(t // 2, num_modes)
    scale = 1.0 / d_model / d_model
    hi = jax.lax.Precision.HIGHEST
    xq = jnp.transpose(q, (0, 3, 2, 1))
    xk = jnp.transpose(k, (0, 3, 2, 1))
    xv = jnp.transpose(v, (0, 3, 2, 1))
    xq_ft = jnp.fft.rfft(xq, axis=-1)[..., :m]
    xk_ft = jnp.fft.rfft(xk, axis=-1)[..., :m]
    xv_ft = jnp.fft.rfft(xv, axis=-1)[..., :m]
    xqk = jnp.einsum('bhdx,bhdy->bhxy', xq_ft, xk_ft, precision=hi)
    xqk = jnp.tanh(xqk)
    xqkv = jnp.einsum('bhxy,bhdy->bhdx', xqk, xv_ft, precision=hi)
    out_ft = jnp.zeros((b, h, c, t // 2 + 1), dtype=jnp.complex64)
    out_ft = out_ft.at[..., :m].set(xqkv)
    out = jnp.fft.irfft(out_ft * scale, n=t, axis=-1)
    return jnp.transpose(out, (0, 3, 2, 1))


if __name__ == "__main__":
    key = jax.random.PRNGKey(0)
    b, t, c, h = 2, 16, 4, 8       # (batch, seq, channels, mw_dim)
    d_model = 32
    num_modes = 16                 # -> m = min(t//2, 16) = 8 kept modes

    kq, kk, kv = jax.random.split(key, 3)
    q = jax.random.normal(kq, (b, t, c, h), dtype=jnp.float32)
    k = jax.random.normal(kk, (b, t, c, h), dtype=jnp.float32)
    v = jax.random.normal(kv, (b, t, c, h), dtype=jnp.float32)

    out = feaf_lowpass(q, k, v, d_model=d_model, num_modes=num_modes)
    out = jax.block_until_ready(out)

    ref = feaf_lowpass_ref(q, k, v, d_model=d_model, num_modes=num_modes)
    # Tolerance reflects bf16 operands in the forward/inverse DFT matmuls (f32 accumulation);
    # structural bugs (wrong mask / layout / DFT) would produce O(1) relative errors.
    np.testing.assert_allclose(np.asarray(out), np.asarray(ref), rtol=5e-2, atol=2e-3)

    print("KERNEL_OK")
</pallas_src>

<mosaic_0001>
module attributes {stable_mosaic.version = 11 : i64} {
  func.func @_feaf_kernel(%arg0: i32, %arg1: memref<1x16x32xbf16, #tpu.memory_space<vmem>>, %arg2: memref<1x16x32xbf16, #tpu.memory_space<vmem>>, %arg3: memref<1x16x32xbf16, #tpu.memory_space<vmem>>, %arg4: memref<16x16xbf16, #tpu.memory_space<vmem>>, %arg5: memref<16x16xbf16, #tpu.memory_space<vmem>>, %arg6: memref<64x32xf32, #tpu.memory_space<vmem>>, %arg7: memref<1x16x32xf32, #tpu.memory_space<vmem>>) attributes {dimension_semantics = [#tpu.dimension_semantics<parallel>], iteration_bounds = array<i64: 2>, scalar_prefetch = 0 : i64, scratch_operands = 0 : i64, tpu.core_type = #tpu.core_type<tc>, window_params = [{transform_indices = @transform_0, window_bounds = array<i64: 1, 16, 32>}, {transform_indices = @transform_1, window_bounds = array<i64: 1, 16, 32>}, {transform_indices = @transform_2, window_bounds = array<i64: 1, 16, 32>}, {pipeline_mode = #tpu.pipeline_mode<synchronous>, transform_indices = @transform_3, window_bounds = array<i64: 16, 16>}, {pipeline_mode = #tpu.pipeline_mode<synchronous>, transform_indices = @transform_4, window_bounds = array<i64: 16, 16>}, {pipeline_mode = #tpu.pipeline_mode<synchronous>, transform_indices = @transform_5, window_bounds = array<i64: 64, 32>}, {transform_indices = @transform_6, window_bounds = array<i64: 1, 16, 32>}]} {
    %c0 = arith.constant 0 : index
    %c0_0 = arith.constant 0 : index
    %0 = vector.load %arg4[%c0, %c0_0] : memref<16x16xbf16, #tpu.memory_space<vmem>>, vector<16x16xbf16>
    %c0_1 = arith.constant 0 : index
    %c0_2 = arith.constant 0 : index
    %1 = vector.load %arg5[%c0_1, %c0_2] : memref<16x16xbf16, #tpu.memory_space<vmem>>, vector<16x16xbf16>
    %c0_3 = arith.constant 0 : index
    %c0_4 = arith.constant 0 : index
    %2 = vector.load %arg6[%c0_3, %c0_4] : memref<64x32xf32, #tpu.memory_space<vmem>>, vector<64x32xf32>
    %c0_5 = arith.constant 0 : index
    %c0_6 = arith.constant 0 : index
    %c0_7 = arith.constant 0 : index
    %3 = vector.load %arg1[%c0_5, %c0_6, %c0_7] : memref<1x16x32xbf16, #tpu.memory_space<vmem>>, vector<1x16x32xbf16>
    %4 = vector.shape_cast %3 : vector<1x16x32xbf16> to vector<16x32xbf16>
    %c0_8 = arith.constant 0 : index
    %c0_9 = arith.constant 0 : index
    %c0_10 = arith.constant 0 : index
    %5 = vector.load %arg2[%c0_8, %c0_9, %c0_10] : memref<1x16x32xbf16, #tpu.memory_space<vmem>>, vector<1x16x32xbf16>
    %6 = vector.shape_cast %5 : vector<1x16x32xbf16> to vector<16x32xbf16>
    %c0_11 = arith.constant 0 : index
    %c0_12 = arith.constant 0 : index
    %c0_13 = arith.constant 0 : index
    %7 = vector.load %arg3[%c0_11, %c0_12, %c0_13] : memref<1x16x32xbf16, #tpu.memory_space<vmem>>, vector<1x16x32xbf16>
    %8 = vector.shape_cast %7 : vector<1x16x32xbf16> to vector<16x32xbf16>
    %cst = arith.constant dense<0.000000e+00> : vector<16x32xf32>
    %9 = tpu.matmul %0, %4, %cst {dimension_numbers = #tpu.dot_dimension_numbers<[1], [0], [0], [1], [0, 0, 1, 1], [], []>} : vector<16x16xbf16>, vector<16x32xbf16>, vector<16x32xf32> -> vector<16x32xf32>
    %cst_14 = arith.constant dense<0.000000e+00> : vector<16x32xf32>
    %10 = tpu.matmul %0, %6, %cst_14 {dimension_numbers = #tpu.dot_dimension_numbers<[1], [0], [0], [1], [0, 0, 1, 1], [], []>} : vector<16x16xbf16>, vector<16x32xbf16>, vector<16x32xf32> -> vector<16x32xf32>
    %cst_15 = arith.constant dense<0.000000e+00> : vector<16x32xf32>
    %11 = tpu.matmul %0, %8, %cst_15 {dimension_numbers = #tpu.dot_dimension_numbers<[1], [0], [0], [1], [0, 0, 1, 1], [], []>} : vector<16x16xbf16>, vector<16x32xbf16>, vector<16x32xf32> -> vector<16x32xf32>
    %12 = vector.extract_strided_slice %9 {offsets = [0, 0], sizes = [8, 32], strides = [1, 1]} : vector<16x32xf32> to vector<8x32xf32>
    %13 = vector.extract_strided_slice %9 {offsets = [8, 0], sizes = [8, 32], strides = [1, 1]} : vector<16x32xf32> to vector<8x32xf32>
    %14 = vector.extract_strided_slice %10 {offsets = [0, 0], sizes = [8, 32], strides = [1, 1]} : vector<16x32xf32> to vector<8x32xf32>
    %15 = vector.extract_strided_slice %10 {offsets = [8, 0], sizes = [8, 32], strides = [1, 1]} : vector<16x32xf32> to vector<8x32xf32>
    %16 = vector.extract_strided_slice %11 {offsets = [0, 0], sizes = [8, 32], strides = [1, 1]} : vector<16x32xf32> to vector<8x32xf32>
    %17 = vector.extract_strided_slice %11 {offsets = [8, 0], sizes = [8, 32], strides = [1, 1]} : vector<16x32xf32> to vector<8x32xf32>
    %18 = tpu.concatenate %14, %14, %14, %14, %14, %14, %14, %14 in 0 : vector<8x32xf32>, vector<8x32xf32>, vector<8x32xf32>, vector<8x32xf32>, vector<8x32xf32>, vector<8x32xf32>, vector<8x32xf32>, vector<8x32xf32> -> vector<64x32xf32>
    %19 = arith.mulf %18, %2 : vector<64x32xf32>
    %20 = tpu.concatenate %15, %15, %15, %15, %15, %15, %15, %15 in 0 : vector<8x32xf32>, vector<8x32xf32>, vector<8x32xf32>, vector<8x32xf32>, vector<8x32xf32>, vector<8x32xf32>, vector<8x32xf32>, vector<8x32xf32> -> vector<64x32xf32>
    %21 = arith.mulf %20, %2 : vector<64x32xf32>
    %22 = tpu.concatenate %16, %16, %16, %16, %16, %16, %16, %16 in 0 : vector<8x32xf32>, vector<8x32xf32>, vector<8x32xf32>, vector<8x32xf32>, vector<8x32xf32>, vector<8x32xf32>, vector<8x32xf32>, vector<8x32xf32> -> vector<64x32xf32>
    %23 = arith.mulf %22, %2 : vector<64x32xf32>
    %24 = tpu.concatenate %17, %17, %17, %17, %17, %17, %17, %17 in 0 : vector<8x32xf32>, vector<8x32xf32>, vector<8x32xf32>, vector<8x32xf32>, vector<8x32xf32>, vector<8x32xf32>, vector<8x32xf32>, vector<8x32xf32> -> vector<64x32xf32>
    %25 = arith.mulf %24, %2 : vector<64x32xf32>
    %cst_16 = arith.constant dense<0.000000e+00> : vector<8x64xf32>
    %26 = tpu.matmul %12, %19, %cst_16 {dimension_numbers = #tpu.dot_dimension_numbers<[1], [1], [0], [0], [0, 0, 1, 0], [], []>} : vector<8x32xf32>, vector<64x32xf32>, vector<8x64xf32> -> vector<8x64xf32>
    %cst_17 = arith.constant dense<0.000000e+00> : vector<8x64xf32>
    %27 = tpu.matmul %13, %21, %cst_17 {dimension_numbers = #tpu.dot_dimension_numbers<[1], [1], [0], [0], [0, 0, 1, 0], [], []>} : vector<8x32xf32>, vector<64x32xf32>, vector<8x64xf32> -> vector<8x64xf32>
    %28 = arith.subf %26, %27 : vector<8x64xf32>
    %cst_18 = arith.constant dense<0.000000e+00> : vector<8x64xf32>
    %29 = tpu.matmul %12, %21, %cst_18 {dimension_numbers = #tpu.dot_dimension_numbers<[1], [1], [0], [0], [0, 0, 1, 0], [], []>} : vector<8x32xf32>, vector<64x32xf32>, vector<8x64xf32> -> vector<8x64xf32>
    %cst_19 = arith.constant dense<0.000000e+00> : vector<8x64xf32>
    %30 = tpu.matmul %13, %19, %cst_19 {dimension_numbers = #tpu.dot_dimension_numbers<[1], [1], [0], [0], [0, 0, 1, 0], [], []>} : vector<8x32xf32>, vector<64x32xf32>, vector<8x64xf32> -> vector<8x64xf32>
    %31 = arith.addf %29, %30 : vector<8x64xf32>
    %32 = math.absf %28 : vector<8x64xf32>
    %cst_20 = arith.constant -2.000000e+00 : f32
    %33 = vector.broadcast %cst_20 : f32 to vector<8x64xf32>
    %34 = arith.mulf %33, %32 : vector<8x64xf32>
    %35 = math.exp %34 : vector<8x64xf32>
    %36 = arith.mulf %35, %35 : vector<8x64xf32>
    %cst_21 = arith.constant 0.000000e+00 : f32
    %37 = vector.broadcast %cst_21 : f32 to vector<8x64xf32>
    %38 = arith.cmpf olt, %28, %37 : vector<8x64xf32>
    %cst_22 = arith.constant 1.000000e+00 : f32
    %39 = vector.broadcast %cst_22 : f32 to vector<8x64xf32>
    %40 = arith.subf %39, %36 : vector<8x64xf32>
    %cst_23 = arith.constant 0.000000e+00 : f32
    %41 = vector.broadcast %cst_23 : f32 to vector<8x64xf32>
    %42 = arith.subf %41, %40 : vector<8x64xf32>
    %cst_24 = arith.constant 1.000000e+00 : f32
    %43 = vector.broadcast %cst_24 : f32 to vector<8x64xf32>
    %44 = arith.subf %43, %36 : vector<8x64xf32>
    %45 = arith.select %38, %42, %44 : vector<8x64xi1>, vector<8x64xf32>
    %cst_25 = arith.constant 2.000000e+00 : f32
    %46 = vector.broadcast %cst_25 : f32 to vector<8x64xf32>
    %47 = arith.mulf %46, %31 : vector<8x64xf32>
    %48 = math.sin %47 : vector<8x64xf32>
    %cst_26 = arith.constant 2.000000e+00 : f32
    %49 = vector.broadcast %cst_26 : f32 to vector<8x64xf32>
    %50 = arith.mulf %49, %35 : vector<8x64xf32>
    %51 = arith.mulf %48, %50 : vector<8x64xf32>
    %cst_27 = arith.constant 1.000000e+00 : f32
    %52 = vector.broadcast %cst_27 : f32 to vector<8x64xf32>
    %53 = arith.addf %52, %36 : vector<8x64xf32>
    %cst_28 = arith.constant 2.000000e+00 : f32
    %54 = vector.broadcast %cst_28 : f32 to vector<8x64xf32>
    %55 = arith.mulf %54, %31 : vector<8x64xf32>
    %56 = math.cos %55 : vector<8x64xf32>
    %cst_29 = arith.constant 2.000000e+00 : f32
    %57 = vector.broadcast %cst_29 : f32 to vector<8x64xf32>
    %58 = arith.mulf %57, %35 : vector<8x64xf32>
    %59 = arith.mulf %56, %58 : vector<8x64xf32>
    %60 = arith.addf %53, %59 : vector<8x64xf32>
    %cst_30 = arith.constant 1.000000e+00 : f32
    %61 = vector.broadcast %cst_30 : f32 to vector<8x64xf32>
    %62 = arith.divf %61, %60 : vector<8x64xf32>
    %63 = arith.mulf %45, %62 : vector<8x64xf32>
    %64 = arith.mulf %51, %62 : vector<8x64xf32>
    %cst_31 = arith.constant dense<0.000000e+00> : vector<8x32xf32>
    %65 = tpu.matmul %63, %23, %cst_31 {dimension_numbers = #tpu.dot_dimension_numbers<[1], [0], [0], [1], [0, 0, 1, 1], [], []>} : vector<8x64xf32>, vector<64x32xf32>, vector<8x32xf32> -> vector<8x32xf32>
    %cst_32 = arith.constant dense<0.000000e+00> : vector<8x32xf32>
    %66 = tpu.matmul %64, %25, %cst_32 {dimension_numbers = #tpu.dot_dimension_numbers<[1], [0], [0], [1], [0, 0, 1, 1], [], []>} : vector<8x64xf32>, vector<64x32xf32>, vector<8x32xf32> -> vector<8x32xf32>
    %67 = arith.subf %65, %66 : vector<8x32xf32>
    %cst_33 = arith.constant dense<0.000000e+00> : vector<8x32xf32>
    %68 = tpu.matmul %63, %25, %cst_33 {dimension_numbers = #tpu.dot_dimension_numbers<[1], [0], [0], [1], [0, 0, 1, 1], [], []>} : vector<8x64xf32>, vector<64x32xf32>, vector<8x32xf32> -> vector<8x32xf32>
    %cst_34 = arith.constant dense<0.000000e+00> : vector<8x32xf32>
    %69 = tpu.matmul %64, %23, %cst_34 {dimension_numbers = #tpu.dot_dimension_numbers<[1], [0], [0], [1], [0, 0, 1, 1], [], []>} : vector<8x64xf32>, vector<64x32xf32>, vector<8x32xf32> -> vector<8x32xf32>
    %70 = arith.addf %68, %69 : vector<8x32xf32>
    %71 = tpu.concatenate %67, %70 in 0 : vector<8x32xf32>, vector<8x32xf32> -> vector<16x32xf32>
    %72 = arith.truncf %71 : vector<16x32xf32> to vector<16x32xbf16>
    %cst_35 = arith.constant dense<0.000000e+00> : vector<16x32xf32>
    %73 = tpu.matmul %1, %72, %cst_35 {dimension_numbers = #tpu.dot_dimension_numbers<[1], [0], [0], [1], [0, 0, 1, 1], [], []>} : vector<16x16xbf16>, vector<16x32xbf16>, vector<16x32xf32> -> vector<16x32xf32>
    %c0_36 = arith.constant 0 : index
    %c0_37 = arith.constant 0 : index
    %c0_38 = arith.constant 0 : index
    %74 = vector.load %arg7[%c0_36, %c0_37, %c0_38] : memref<1x16x32xf32, #tpu.memory_space<vmem>>, vector<1x16x32xf32>
    %75 = vector.shape_cast %74 : vector<1x16x32xf32> to vector<16x32xf32>
    %76 = vector.shape_cast %73 : vector<16x32xf32> to vector<1x16x32xf32>
    tpu.vector_store %arg7[%c0_36, %c0_37, %c0_38], %76 {strides = array<i32>} : memref<1x16x32xf32, #tpu.memory_space<vmem>>, vector<1x16x32xf32>,
    return
  }
  func.func @transform_0(%arg0: i32) -> (i32, i32, i32) {
    %c0_i32 = arith.constant 0 : i32
    %c0_i32_0 = arith.constant 0 : i32
    %c0_i32_1 = arith.constant 0 : i32
    return %arg0, %c0_i32, %c0_i32_0 : i32, i32, i32
  }
  func.func @transform_1(%arg0: i32) -> (i32, i32, i32) {
    %c0_i32 = arith.constant 0 : i32
    %c0_i32_0 = arith.constant 0 : i32
    %c0_i32_1 = arith.constant 0 : i32
    return %arg0, %c0_i32, %c0_i32_0 : i32, i32, i32
  }
  func.func @transform_2(%arg0: i32) -> (i32, i32, i32) {
    %c0_i32 = arith.constant 0 : i32
    %c0_i32_0 = arith.constant 0 : i32
    %c0_i32_1 = arith.constant 0 : i32
    return %arg0, %c0_i32, %c0_i32_0 : i32, i32, i32
  }
  func.func @transform_3(%arg0: i32) -> (i32, i32) {
    %c0_i32 = arith.constant 0 : i32
    %c0_i32_0 = arith.constant 0 : i32
    %c0_i32_1 = arith.constant 0 : i32
    return %c0_i32, %c0_i32_0 : i32, i32
  }
  func.func @transform_4(%arg0: i32) -> (i32, i32) {
    %c0_i32 = arith.constant 0 : i32
    %c0_i32_0 = arith.constant 0 : i32
    %c0_i32_1 = arith.constant 0 : i32
    return %c0_i32, %c0_i32_0 : i32, i32
  }
  func.func @transform_5(%arg0: i32) -> (i32, i32) {
    %c0_i32 = arith.constant 0 : i32
    %c0_i32_0 = arith.constant 0 : i32
    %c0_i32_1 = arith.constant 0 : i32
    return %c0_i32, %c0_i32_0 : i32, i32
  }
  func.func @transform_6(%arg0: i32) -> (i32, i32, i32) {
    %c0_i32 = arith.constant 0 : i32
    %c0_i32_0 = arith.constant 0 : i32
    %c0_i32_1 = arith.constant 0 : i32
    return %arg0, %c0_i32, %c0_i32_0 : i32, i32, i32
  }
}

</mosaic_0001>

<bundles_post_ra>
// kernel: feaf_lowpass.1
= control target key start
LH: loop header
LB: loop body
LE: loop exit
PB: predicated region body
PF: predicated region fallthrough
CT: control target
= control target key end

     0   :  { %s2008_s21 = smov 0   ;;  %s2290_s0 = inlined_call_operand.vmem [shape: bf16[2,16,32], index: 0, kind: input, shape index: {}]   ;;  %s2291_s1 = inlined_call_operand.vmem [shape: bf16[2,16,32], index: 1, kind: input, shape index: {}]   ;;  %s2292_s2 = inlined_call_operand.vmem [shape: bf16[2,16,32], index: 2, kind: input, shape index: {}]   ;;  %s2293_s3 = inlined_call_operand.vmem [shape: bf16[16,16], index: 3, kind: input, shape index: {}]   ;;  %s2294_s4 = inlined_call_operand.vmem [shape: bf16[16,16], index: 4, kind: input, shape index: {}]   ;;  %s2295_s5 = inlined_call_operand.vmem [shape: f32[64,32], index: 5, kind: input, shape index: {}]   ;;  %s2296_s6 = inlined_call_operand.vmem [shape: f32[2,16,32], index: 6, kind: output, shape index: {}]  }
   0x1 LB: > { %s1474_s22 = sadd.s32 4294967295, %s1962_s21   ;;  %p1478_p0 = scmp.ge.s32.totalorder %s1962_s21, 1  ;;  %s1962_s21 = sphi %s2008_s21, %s16_s21  }
   0x2   : > { %p232_p1 = scmp.lt.s32.totalorder %s1962_s21, 3 }
   0x4   : > { %p233_p2 = pnand %p1478_p0, %p232_p1 }
   0x5   : > { %p272_p3 = scmp.lt.s32.totalorder (!%p233_p2), %s1474_s22, 1  ;;  %v1964_v0 = vmov (!%p233_p2), 0.0   ;;  %vm1965_vm0 = vmmov (!%p233_p2), 0   ;;  %v1944_v1 = vld [vmem:[%s2293_s3] sm:$0xff] (!%p233_p2)   ;;  %vm322_vm1 = vcmask (!%p233_p2), 130048   ;;  %v1966_v5 = vmov (!%p233_p2), 0.0|0.0  }
   0x6   : > { %236 = sbr.rel (%p233_p2) target bundleno = 1121 (0x461), region = 44  ;;  %1636 = vmatprep.subr.bf16.mxu1 (!%p233_p2), %v1964_v0  ;;  %1638 = vmatprep.mubr.msk.bf16.mxu1 (!%p233_p2), %vm1965_vm0, %v1964_v0  ;;  %v2052_v6 = vld [vmem:[%s2295_s5] sm:$0xff] (!%p233_p2)  ;;  %v2057_v7 = vld [vmem:[%s2295_s5 + $0x8] sm:$0xff] (!%p233_p2)  ;;  %vm493_vm2 = vcmask (!%p233_p2), 261120   ;;  %v2074_v21 = vld [vmem:[%s2295_s5 + $0x10] sm:$0xff] (!%p233_p2) }
   0x7   : > { %1630 = vmatprep.subr.bf16.mxu0 (!%p233_p2), %v1964_v0  ;;  %1632 = vmatprep.mubr.msk.bf16.mxu0 (!%p233_p2), %vm1965_vm0, %v1964_v0  ;;  %vm2065_vm3 = vmpackc.low (!%p233_p2), %vm493_vm2, %vm493_vm2  ;;  %v2079_v22 = vld [vmem:[%s2295_s5 + $0x18] sm:$0xff] (!%p233_p2)  ;;  %v2098_v33 = vld [vmem:[%s2295_s5 + $0x20] sm:$0xff] (!%p233_p2) }
   0x8   : > { %v2103_v34 = vld [vmem:[%s2295_s5 + $0x28] sm:$0xff] (!%p233_p2)  ;;  %v2118_v42 = vld [vmem:[%s2295_s5 + $0x30] sm:$0xff] (!%p233_p2)  ;;  %v2123_v43 = vld [vmem:[%s2295_s5 + $0x38] sm:$0xff] (!%p233_p2) }
   0xd   : > { %s2300_s22 = smov (!%p272_p3, %s1474_s22), 1 }
   0xe   : > { %s1546_s23 = sshll.u32 %s2300_s22, 3 }
   0xf   : > { %s281_s26 = scalar_lea.vmem %s2291_s1, %s1546_s23  ;;  %s286_s7 = scalar_lea.vmem %s2292_s2, %s1546_s23 }
  0x10   : > { %v1943_v2 = vld [vmem:[%s281_s26] sm:$0xff]   ;;  %s276_s10 = scalar_lea.vmem %s2290_s0, %s1546_s23 }
  0x11   : > { %v1945_v3 = vld [vmem:[%s276_s10] sm:$0xff]   ;;  %1637 = vmatpush3.bf16.msra.mxu1 %v1943_v2 }
  0x12   : > { %1631 = vmatpush3.bf16.msra.mxu0 %v1945_v3  ;;  %v1946_v4 = vld [vmem:[%s286_s7] sm:$0xff]   ;;  %1806 = vmatprep.subr.bf16.mxu1 %v1966_v5  ;;  %s1549_s7 = sshll.u32 %s2300_s22, 4 }
  0x13   : > { %1642 = vmatprep.subr.bf16.mxu0 %v1964_v0  ;;  %s291_s10 = scalar_lea.vmem %s2296_s6, %s1549_s7 }
  0x14   : > { %1639 = vmatmul.mubr.msk.bf16.vlgmr.msra.gmra.mrb[0].mxu1 %vm322_vm1, %v1944_v1 }
  0x15   : > { %1633 = vmatmul.mubr.msk.bf16.vlgmr.msra.gmra.mrb[0].mxu0 %vm322_vm1, %v1944_v1  ;;  %1664 = vmatprep.mubr.msk.f32.mxu1 %vm1965_vm0, %v1964_v0 }
  0x16   : > { %1643 = vmatpush3.bf16.msra.mxu0 %v1946_v4  ;;  %1644 = vmatprep.mubr.msk.bf16.mxu0 %vm1965_vm0, %v1964_v0 }
  0x17   : > { %1822 = vmatprep.subr.bf16.mxu0 %v1966_v5 }
  0x1d   : > { %1645 = vmatmul.mubr.msk.bf16.vlgmr.msra.gmra.mrb[4].mxu0 %vm322_vm1, %v1944_v1 }
  0x1e   : > { %1683 = vmatprep.mubr.msk.f32.mxu0 %vm1965_vm0, %v1964_v0 }
  0xe7   : > { %v407_v8 = vpop.f32.mrb[0].mxu1 }
  0xe8   : > { %v1640_v9 = vpop.f32.mrb[1].mxu1  ;;  %v461_v10 = vmul.f32 %v407_v8, %v2052_v6  ;;  %v462_v11 = vmul.f32 %v407_v8, %v2057_v7  ;;  %v2061_v12 = vpop.f32.mrb[0].mxu0  ;;  %v463_v25 = vmul.f32 %v407_v8, %v2074_v21  ;;  %v464_v26 = vmul.f32 %v407_v8, %v2079_v22 }
  0xe9   : > { %v410_v13 = vpop.f32.mrb[2].mxu1  ;;  %v1634_v15 = vpop.f32.mrb[1].mxu0  ;;  %v465_v37 = vmul.f32 %v407_v8, %v2098_v33  ;;  %v466_v38 = vmul.f32 %v407_v8, %v2103_v34  ;;  %v467_v45 = vmul.f32 %v407_v8, %v2118_v42  ;;  %v468_v46 = vmul.f32 %v407_v8, %v2123_v43 }
  0xea   : > { %v1641_v16 = vpop.f32.mrb[3].mxu1  ;;  %v1807_v17 = vpack.c.bf16 %v462_v11, %v461_v10  ;;  %v469_v18 = vmul.f32 %v410_v13, %v2052_v6  ;;  %v470_v19 = vmul.f32 %v410_v13, %v2057_v7  ;;  %v363_v20 = vpop.f32.mrb[2].mxu0  ;;  %v471_v27 = vmul.f32 %v410_v13, %v2074_v21 }
  0xeb   : > { %v1635_v23 = vpop.f32.mrb[3].mxu0  ;;  %v472_v28 = vmul.f32 %v410_v13, %v2079_v22  ;;  %v1811_v31 = vpack.c.bf16 %v464_v26, %v463_v25  ;;  %v473_v39 = vmul.f32 %v410_v13, %v2098_v33  ;;  %v474_v40 = vmul.f32 %v410_v13, %v2103_v34 }
  0xec   : > { %1809 = vmatpush3.bf16.xpose.msk.msra.mxu1 %vm2065_vm3, %v1807_v17  ;;  %v1823_v24 = vpack.c.bf16 %v470_v19, %v469_v18  ;;  %v1815_v41 = vpack.c.bf16 %v466_v38, %v465_v37  ;;  %v475_v47 = vmul.f32 %v410_v13, %v2118_v42  ;;  %v476_v48 = vmul.f32 %v410_v13, %v2123_v43 }
  0xed   : > { %1810 = vmatprep.subr.bf16.mxu1 %v1966_v5  ;;  %v1827_v36 = vpack.c.bf16 %v472_v28, %v471_v27  ;;  %v1831_v44 = vpack.c.bf16 %v474_v40, %v473_v39  ;;  %v1819_v49 = vpack.c.bf16 %v468_v46, %v467_v45  ;;  %v1967_v23 = vmov 683565275  }
  0xee   : > { %1825 = vmatpush3.bf16.xpose.msk.msra.mxu0 %vm2065_vm3, %v1823_v24  ;;  %v1835_v50 = vpack.c.bf16 %v476_v48, %v475_v47  ;;  %v1968_v25 = vmov 2475754826   ;;  %v1969_v28 = vmov 2131351028   ;;  %v1971_v37 = vmov 920167782  }
  0xef   : > { %1826 = vmatprep.subr.bf16.mxu0 %v1966_v5  ;;  %v1972_v40 = vmov 1326507024  }
  0xf0   : > { %v2091_v29 = vpop.f32.mrb[4].mxu0 }
  0xf1   : > { %v1646_v30 = vpop.f32.mrb[5].mxu0  ;;  %v477_v51 = vmul.f32 %v2091_v29, %v2052_v6  ;;  %v478_v52 = vmul.f32 %v2091_v29, %v2057_v7  ;;  %v479_v54 = vmul.f32 %v2091_v29, %v2074_v21  ;;  %v480_v55 = vmul.f32 %v2091_v29, %v2079_v22 }
  0xf2   : > { %v2093_v32 = vpop.f32.mrb[6].mxu0  ;;  %v481_v57 = vmul.f32 %v2091_v29, %v2098_v33  ;;  %v482_v58 = vmul.f32 %v2091_v29, %v2103_v34  ;;  %v483_v60 = vmul.f32 %v2091_v29, %v2118_v42  ;;  %v484_v61 = vmul.f32 %v2091_v29, %v2123_v43 }
  0xf3   : > { %v1647_v35 = vpop.f32.mrb[7].mxu0  ;;  %v2183_v53 = vpack.c.bf16 %v478_v52, %v477_v51  ;;  %v2191_v56 = vpack.c.bf16 %v480_v55, %v479_v54 }
  0xf4   : > { %1813 = vmatpush3.bf16.xpose.msk.msra.mxu1 %vm2065_vm3, %v1811_v31  ;;  %v2199_v59 = vpack.c.bf16 %v482_v58, %v481_v57  ;;  %v2207_v62 = vpack.c.bf16 %v484_v61, %v483_v60 }
  0xf5   : > { %1814 = vmatprep.subr.bf16.mxu1 %v1966_v5 }
  0xf6   : > { %1829 = vmatpush3.bf16.xpose.msk.msra.mxu0 %vm2065_vm3, %v1827_v36 }
  0xf7   : > { %1830 = vmatprep.subr.bf16.mxu0 %v1966_v5 }
  0xfc   : > { %1817 = vmatpush3.bf16.xpose.msk.msra.mxu1 %vm2065_vm3, %v1815_v41 }
  0xfd   : > { %1818 = vmatprep.subr.bf16.mxu1 %v1966_v5 }
  0xfe   : > { %1833 = vmatpush3.bf16.xpose.msk.msra.mxu0 %vm2065_vm3, %v1831_v44 }
  0xff   : > { %1834 = vmatprep.subr.bf16.mxu0 %v1966_v5 }
 0x104   : > { %1821 = vmatpush3.bf16.xpose.msk.msra.mxu1 %vm2065_vm3, %v1819_v49 }
 0x105   : > { %1838 = vmatprep.subr.bf16.mxu1 %v1966_v5 }
 0x106   : > { %1837 = vmatpush3.bf16.xpose.msk.msra.mxu0 %vm2065_vm3, %v1835_v50 }
 0x107   : > { %1870 = vmatprep.subr.bf16.mxu0 %v1966_v5 }
 0x10b   : > { %1665 = vmatmul.mubr.msk.f32.vlgmr.msra.gmra.mrb[4].mxu1 %vm493_vm2, %v2061_v12 }
 0x10c   : > { %1841 = vmatpush3.bf16.xpose.msk.msra.mxu1 %vm2065_vm3, %v1807_v17  ;;  %1702 = vmatprep.mubr.msk.f32.mxu1 %vm1965_vm0, %v1964_v0 }
 0x10d   : > { %1684 = vmatmul.mubr.msk.f32.vlgmr.msra.gmra.mrb[8].mxu0 %vm493_vm2, %v363_v20  ;;  %1842 = vmatprep.subr.bf16.mxu1 %v1966_v5 }
 0x10e   : > { %1740 = vmatprep.mubr.msk.f32.mxu0 %vm1965_vm0, %v1964_v0  ;;  %1872 = vmatpush3.bf16.msra.mxu0 %v2183_v53 }
 0x10f   : > { %1873 = vmatprep.subr.bf16.mxu0 %v1966_v5 }
 0x112   : > { %1875 = vmatpush3.bf16.msra.mxu0 %v2191_v56 }
 0x113   : > { %1876 = vmatprep.subr.bf16.mxu0 %v1966_v5 }
 0x114   : > { %1845 = vmatpush3.bf16.xpose.msk.msra.mxu1 %vm2065_vm3, %v1811_v31  ;;  %v1970_v31 = vmov 2102212464  }
 0x115   : > { %1846 = vmatprep.subr.bf16.mxu1 %v1966_v5 }
 0x116   : > { %1878 = vmatpush3.bf16.msra.mxu0 %v2199_v59 }
 0x117   : > { %1879 = vmatprep.subr.bf16.mxu0 %v1966_v5 }
 0x11a   : > { %1881 = vmatpush3.bf16.msra.mxu0 %v2207_v62 }
 0x11b   : > { %1882 = vmatprep.subr.bf16.mxu0 %v1966_v5 }
 0x11c   : > { %1849 = vmatpush3.bf16.xpose.msk.msra.mxu1 %vm2065_vm3, %v1815_v41 }
 0x11d   : > { %1850 = vmatprep.subr.bf16.mxu1 %v1966_v5 }
 0x124   : > { %1853 = vmatpush3.bf16.xpose.msk.msra.mxu1 %vm2065_vm3, %v1819_v49 }
 0x125   : > { %1854 = vmatprep.subr.bf16.mxu1 %v1966_v5 }
 0x12b   : > { %1703 = vmatmul.mubr.msk.f32.vlgmr.msra.gmra.mrb[6].mxu1 %vm493_vm2, %v363_v20 }
 0x12c   : > { %1857 = vmatpush3.bf16.xpose.msk.msra.mxu1 %vm2065_vm3, %v1823_v24  ;;  %1721 = vmatprep.mubr.msk.f32.mxu1 %vm1965_vm0, %v1964_v0 }
 0x12d   : > { %1858 = vmatprep.subr.bf16.mxu1 %v1966_v5 }
 0x134   : > { %1861 = vmatpush3.bf16.xpose.msk.msra.mxu1 %vm2065_vm3, %v1827_v36 }
 0x135   : > { %1862 = vmatprep.subr.bf16.mxu1 %v1966_v5 }
 0x13c   : > { %1865 = vmatpush3.bf16.xpose.msk.msra.mxu1 %vm2065_vm3, %v1831_v44 }
 0x13d   : > { %1866 = vmatprep.subr.bf16.mxu1 %v1966_v5 }
 0x144   : > { %1869 = vmatpush3.bf16.xpose.msk.msra.mxu1 %vm2065_vm3, %v1835_v50 }
 0x145   : > { %1800 = vmatprep.subr.bf16.mxu1 %v1964_v0 }
 0x14b   : > { %1722 = vmatmul.mubr.msk.f32.vlgmr.msra.gmra.mrb[6].mxu1 %vm493_vm2, %v2061_v12 }
 0x14c   : > { %1802 = vmatprep.mubr.msk.bf16.mxu1 %vm1965_vm0, %v1964_v0 }
 0x1de   : > { %v587_v63 = vpop.f32.mrb[4].mxu1 }
 0x1df   : > { %v1666_v1 = vpop.f32.mrb[5].mxu1 }
 0x1e0   : > { %v684_v2 = vpop.f32.mrb[8].mxu0 }
 0x1e1   : > { %v2211_v3 = vsub.f32 %v587_v63, %v684_v2  ;;  %v1685_v4 = vpop.f32.mrb[9].mxu0 }
 0x21e   : > { %v825_v8 = vpop.f32.mrb[6].mxu1 }
 0x21f   : > { %v2213_v9 = vmul.f32 2.0, %v825_v8  ;;  %v1723_v10 = vpop.f32.mrb[7].mxu1 }
 0x221   : > { %v842_v11 = vand.u32 2139095040, %v2213_v9  ;;  %v839_v15 = vand.u32 2147483647, %v2213_v9  ;;  %vm841_vm11 = vcmp.lt.s32.totalorder %v2213_v9, 0 }
 0x223   : > { %v843_v12 = vshrl.u32 %v842_v11, 23  ;;  %v846_v18 = vand.u32 8388607, %v839_v15  ;;  %vm840_vm12 = vcmp.le.f32.partialorder %v839_v15, 0.7853982 }
 0x225   : > { %v1530_v13 = vadd.s32 4294967169, %v843_v12  ;;  %v847_v44 = vor.u32 8388608, %v846_v18 }
 0x227   : > { %v849_v14 = vadd.s32 1, %v1530_v13  ;;  %v887_v61 = vshll.u32 %v847_v44, 8 }
 0x229   : > { %vm850_vm4 = vcmp.gt.s32.totalorder %v849_v14, 0 }
 0x22a   : > { %v851_v16 = vsel %vm850_vm4, %v849_v14, 0 }
 0x22b   : > { %v853_v17 = vand.u32 31, %v851_v16  ;;  %v852_v20 = vshrl.u32 %v851_v16, 5 }
 0x22d   : > { %v854_v19 = vsub.s32 32, %v853_v17  ;;  %v856_v24 = vshll.u32 %v1967_v23, %v853_v17  ;;  %v859_v26 = vshll.u32 %v1968_v25, %v853_v17  ;;  %v862_v30 = vshll.u32 %v1969_v28, %v853_v17 }
 0x22e   : > { %v865_v36 = vshll.u32 %v1970_v31, %v853_v17  ;;  %v868_v39 = vshll.u32 %v1971_v37, %v853_v17  ;;  %vm871_vm5 = vcmp.lt.s32.totalorder %v852_v20, 1  ;;  %vm874_vm6 = vcmp.lt.s32.totalorder %v852_v20, 4 }
 0x22f   : > { %v857_v27 = vshrl.u32 %v1968_v25, %v854_v19  ;;  %v860_v29 = vshrl.u32 %v1969_v28, %v854_v19  ;;  %v863_v35 = vshrl.u32 %v1970_v31, %v854_v19  ;;  %v866_v38 = vshrl.u32 %v1971_v37, %v854_v19 }
 0x230   : > { %v869_v41 = vshrl.u32 %v1972_v40, %v854_v19  ;;  %v855_v54 = vshrl.u32 %v1967_v23, %v854_v19  ;;  %vm873_vm7 = vcmp.lt.s32.totalorder %v852_v20, 3  ;;  %vm872_vm8 = vcmp.lt.s32.totalorder %v852_v20, 2 }
 0x231   : > { %v858_v45 = vor.u32 %v857_v27, %v856_v24  ;;  %v861_v46 = vor.u32 %v860_v29, %v859_v26  ;;  %v864_v47 = vor.u32 %v863_v35, %v862_v30  ;;  %v867_v48 = vor.u32 %v866_v38, %v865_v36 }
 0x232   : > { %v870_v49 = vor.u32 %v869_v41, %v868_v39  ;;  %v829_v39 = vand.u32 2147483647, %v2211_v3 }
 0x233   : > { %v876_v50 = vsel %vm874_vm6, %v864_v47, 2102212464  ;;  %v879_v51 = vsel %vm871_vm5, %v858_v45, %v861_v46  ;;  %v883_v52 = vsel %vm871_vm5, %v861_v46, %v864_v47  ;;  %v880_v55 = vsel %vm874_vm6, %v867_v48, 920167782 }
 0x234   : > { %v884_v57 = vsel %vm874_vm6, %v870_v49, 1326507024  ;;  %v881_v58 = vsel %vm873_vm7, %v864_v47, %v880_v55  ;;  %v875_v63 = vsel %vm871_vm5, %v855_v54, %v858_v45  ;;  %v877_v1 = vsel %vm873_vm7, %v861_v46, %v876_v50 }
 0x235   : > { %v885_v60 = vsel %vm873_vm7, %v867_v48, %v884_v57  ;;  %v882_v2 = vsel %vm872_vm8, %v879_v51, %v881_v58  ;;  %v878_v13 = vsel %vm872_vm8, %v875_v63, %v877_v1  ;;  %v830_v45 = vmul.f32 -2.0, %v829_v39 }
 0x236   : > { %v886_v4 = vsel %vm872_vm8, %v883_v52, %v885_v60  ;;  %v2222_v11 = vmul.u32.u64.low %v887_v61, %v882_v2  ;;  %v2223_v12 = vmul.u32.u64.high %v887_v61, %v882_v2, %v2222_v11  ;;  %v894_v16 = vmul.u32 %v887_v61, %v878_v13 }
 0x237   : > { %v2219_v8 = vmul.u32.u64.low %v887_v61, %v886_v4  ;;  %v2220_v10 = vmul.u32.u64.high %v887_v61, %v886_v4, %v2219_v8  ;;  %v831_v50 = vmul.f32 1.442695, %v830_v45  ;;  %vm931_vm6 = vweird.f32 %v2213_v9 }
 0x238   : > { %v897_v14 = vadd.s32 1, %v2223_v12  ;;  %vm834_vm7 = vcmp.lt.f32.partialorder %v2211_v3, 0.0  ;;  %vm1055_vm8 = vcmask 523264   ;;  %v490_v3 = vmul.f32 %v2093_v32, %v2103_v34 }
 0x239   : > { %vm896_vm9 = vc.u32 %v2220_v10, %v2222_v11  ;;  %v895_v30 = vadd.s32 %v2222_v11, %v2220_v10  ;;  %1948 = vpow2.f32 %v831_v50  ;;  %v492_v39 = vmul.f32 %v2093_v32, %v2123_v43 }
 0x23a   : > { %v898_v17 = vsel %vm896_vm9, %v897_v14, %v2223_v12 }
 0x23b   : > { %v899_v18 = vadd.s32 %v898_v17, %v894_v16 }
 0x23d   : > { %v900_v19 = vadd.s32 536870912, %v899_v18 }
 0x23f   : > { %v901_v20 = vshrl.u32 %v900_v19, 30 }
 0x241   : > { %v902_v23 = vshll.u32 %v901_v20, 30  ;;  %v925_v49 = vsub.s32 4, %v901_v20 }
 0x243   : > { %v903_v24 = vsub.s32 %v899_v18, %v902_v23  ;;  %v926_v54 = vsel %vm841_vm11, %v925_v49, %v901_v20  ;;  %v1949_v63 = vpop.eup %1948 }
 0x244   : > { %v928_v57 = vsel %vm840_vm12, 0, %v926_v54  ;;  %v833_v8 = vmul.f32 %v1949_v63, %v1949_v63  ;;  %v943_v14 = vmul.f32 2.0, %v1949_v63 }
 0x245   : > { %v905_v25 = vsub.s32 0, %v903_v24  ;;  %v932_v58 = vadd.s32 3, %v928_v57  ;;  %v1039_v61 = vand.u32 3, %v928_v57 }
 0x246   : > { %v945_v20 = vadd.f32 1.0, %v833_v8 }
 0x247   : > { %v1531_v26 = vmin.u32 %v905_v25, %v903_v24  ;;  %v933_v60 = vand.u32 3, %v932_v58  ;;  %vm1044_vm14 = vcmp.eq.s32.totalorder %v1039_v61, 2  ;;  %vm1041_vm3 = vcmp.eq.s32.totalorder %v1039_v61, 0 }
 0x248   : > { %vm1040_vm5 = vcmp.lt.s32.totalorder %v1039_v61, 2 }
 0x249   : > { %v907_v27 = vclz %v1531_v26  ;;  %vm938_vm13 = vcmp.eq.s32.totalorder %v933_v60, 2  ;;  %vm935_vm15 = vcmp.eq.s32.totalorder %v933_v60, 0  ;;  %vm934_vm4 = vcmp.lt.s32.totalorder %v933_v60, 2 }
 0x24a   : > { %v835_v26 = vsub.f32 1.0, %v833_v8 }
 0x24b   : > { %v1532_v28 = vadd.s32 4294967294, %v907_v27 }
 0x24c   : > { %v836_v27 = vsub.f32 0.0, %v835_v26 }
 0x24d   : > { %vm1533_vm10 = vcmp.lt.s32.totalorder %v1532_v28, 0 }
 0x24e   : > { %v910_v29 = vsel %vm1533_vm10, 0, %v1532_v28  ;;  %v485_v28 = vmul.f32 %v2093_v32, %v2052_v6 }
 0x24f   : > { %v911_v31 = vsub.s32 32, %v910_v29  ;;  %v915_v35 = vsub.s32 4294967266, %v910_v29  ;;  %v912_v36 = vshll.u32 %v903_v24, %v910_v29  ;;  %v486_v29 = vmul.f32 %v2093_v32, %v2057_v7 }
 0x250   : > { %v489_v7 = vmul.f32 %v2093_v32, %v2098_v33 }
 0x251   : > { %v913_v37 = vshrl.u32 %v895_v30, %v911_v31  ;;  %v916_v38 = vadd.s32 127, %v915_v35  ;;  %v837_v30 = vsel %vm834_vm7, %v836_v27, %v835_v26 }
 0x253   : > { %v914_v40 = vor.u32 %v913_v37, %v912_v36  ;;  %v917_v41 = vshll.u32 %v916_v38, 23  ;;  %v1883_v36 = vpack.c.bf16 %v486_v29, %v485_v28  ;;  %v487_v37 = vmul.f32 %v2093_v32, %v2074_v21 }
 0x254   : > { %v488_v38 = vmul.f32 %v2093_v32, %v2079_v22  ;;  %v1889_v21 = vpack.c.bf16 %v490_v3, %v489_v7  ;;  %v491_v22 = vmul.f32 %v2093_v32, %v2118_v42 }
 0x255   : > { %v918_v44 = vor.u32 4788187, %v917_v41  ;;  %v921_v47 = vcvt.s32.f32 %v914_v40 }
 0x256   : > { %v1886_v6 = vpack.c.bf16 %v488_v38, %v487_v37  ;;  %v1892_v40 = vpack.c.bf16 %v492_v39, %v491_v22 }
 0x257   : > { %v919_v46 = vand.u32 2147483647, %v918_v44 }
 0x259   : > { %v922_v48 = vmul.f32 %v921_v47, %v919_v46 }
 0x25b   : > { %v923_v51 = vxor.u32 2147483648, %v922_v48 }
 0x25d   : > { %v924_v52 = vsel %vm841_vm11, %v923_v51, %v922_v48 }
 0x25e   : > { %v927_v55 = vsel %vm840_vm12, %v2213_v9, %v924_v52 }
 0x25f   : > { %1950 = vcosq.f32 %v927_v55 }
 0x260   : > { %1952 = vsinq.f32 %v927_v55 }
 0x269   : > { %v1951_v1 = vpop.eup %1950 }
 0x26a   : > { %v1953_v2 = vpop.eup %1952  ;;  %v939_v4 = vxor.u32 2147483648, %v1951_v1 }
 0x26b   : > { %v936_v10 = vxor.u32 2147483648, %v1953_v2 }
 0x26c   : > { %v940_v15 = vsel %vm938_vm13, %v939_v4, %v1953_v2  ;;  %v1046_v11 = vsel %vm1044_vm14, %v939_v4, %v1953_v2 }
 0x26d   : > { %v937_v12 = vsel %vm935_vm15, %v1951_v1, %v936_v10  ;;  %v1043_v13 = vsel %vm1041_vm3, %v1951_v1, %v936_v10 }
 0x26e   : > { %v941_v16 = vsel %vm934_vm4, %v937_v12, %v940_v15  ;;  %v1047_v17 = vsel %vm1040_vm5, %v1043_v13, %v1046_v11 }
 0x26f   : > { %v942_v18 = vsel %vm931_vm6, nan, %v941_v16  ;;  %v1048_v19 = vsel %vm931_vm6, nan, %v1047_v17 }
 0x270   : > { %v1049_v23 = vmul.f32 %v1048_v19, %v943_v14  ;;  %v944_v24 = vmul.f32 %v943_v14, %v942_v18 }
 0x272   : > { %v1050_v25 = vadd.f32 %v1049_v23, %v945_v20 }
 0x274   : > { %1954 = vrcp.f32 %v1050_v25 }
 0x27e   : > { %v1955_v9 = vpop.eup %1954 }
 0x27f   : > { %v1053_v31 = vmul.f32 %v1955_v9, %v837_v30  ;;  %v1054_v35 = vmul.f32 %v1955_v9, %v944_v24 }
 0x281   : > { %1741 = vmatmul.mubr.msk.f32.vlgmr.msra.gmra.mrb[10].mxu0 %vm1055_vm8, %v1053_v31 }
 0x282   : > { %1884 = vmatpush3.bf16.msra.mxu0 %v1883_v36  ;;  %1759 = vmatprep.mubr.msk.f32.mxu0 %vm1965_vm0, %v1964_v0 }
 0x283   : > { %1885 = vmatprep.subr.bf16.mxu0 %v1966_v5 }
 0x286   : > { %1887 = vmatpush3.bf16.msra.mxu0 %v1886_v6 }
 0x287   : > { %1888 = vmatprep.subr.bf16.mxu0 %v1966_v5 }
 0x28a   : > { %1890 = vmatpush3.bf16.msra.mxu0 %v1889_v21 }
 0x28b   : > { %1891 = vmatprep.subr.bf16.mxu0 %v1966_v5 }
 0x28e   : > { %1893 = vmatpush3.bf16.msra.mxu0 %v1892_v40 }
 0x28f   : > { %1894 = vmatprep.subr.bf16.mxu0 %v1966_v5 }
 0x291   : > { %1760 = vmatmul.mubr.msk.f32.vlgmr.msra.gmra.mrb[12].mxu0 %vm1055_vm8, %v1054_v35 }
 0x292   : > { %1896 = vmatpush3.bf16.msra.mxu0 %v2183_v53  ;;  %1778 = vmatprep.mubr.msk.f32.mxu0 %vm1965_vm0, %v1964_v0 }
 0x293   : > { %1897 = vmatprep.subr.bf16.mxu0 %v1966_v5 }
 0x296   : > { %1899 = vmatpush3.bf16.msra.mxu0 %v2191_v56 }
 0x297   : > { %1900 = vmatprep.subr.bf16.mxu0 %v1966_v5 }
 0x29a   : > { %1902 = vmatpush3.bf16.msra.mxu0 %v2199_v59  ;;  %v1947_v59 = vld [vmem:[%s2294_s4] sm:$0xff]  }
 0x29b   : > { %1903 = vmatprep.subr.bf16.mxu0 %v1966_v5 }
 0x29e   : > { %1905 = vmatpush3.bf16.msra.mxu0 %v2207_v62 }
 0x29f   : > { %1906 = vmatprep.subr.bf16.mxu0 %v1966_v5 }
 0x2a1   : > { %1779 = vmatmul.mubr.msk.f32.vlgmr.msra.gmra.mrb[14].mxu0 %vm1055_vm8, %v1054_v35 }
 0x2a2   : > { %1908 = vmatpush3.bf16.msra.mxu0 %v1883_v36  ;;  %1797 = vmatprep.mubr.msk.f32.mxu0 %vm1965_vm0, %v1964_v0 }
 0x2a3   : > { %1909 = vmatprep.subr.bf16.mxu0 %v1966_v5 }
 0x2a6   : > { %1911 = vmatpush3.bf16.msra.mxu0 %v1886_v6 }
 0x2a7   : > { %1912 = vmatprep.subr.bf16.mxu0 %v1966_v5 }
 0x2aa   : > { %1914 = vmatpush3.bf16.msra.mxu0 %v1889_v21 }
 0x2ab   : > { %1915 = vmatprep.subr.bf16.mxu0 %v1966_v5 }
 0x2ae   : > { %1917 = vmatpush3.bf16.msra.mxu0 %v1892_v40 }
 0x2b1   : > { %1798 = vmatmul.mubr.msk.f32.vlgmr.msra.gmra.mrb[14].mxu0 %vm1055_vm8, %v1053_v31 }
 0x354   : > { %v1125_v32 = vpop.f32.mrb[10].mxu0 }
 0x355   : > { %v1742_v33 = vpop.f32.mrb[11].mxu0 }
 0x364   : > { %v1198_v34 = vpop.f32.mrb[12].mxu0 }
 0x365   : > { %v1202_v42 = vsub.f32 %v1125_v32, %v1198_v34  ;;  %v1761_v43 = vpop.f32.mrb[13].mxu0 }
 0x384   : > { %v1339_v53 = vpop.f32.mrb[14].mxu0 }
 0x385   : > { %v1343_v56 = vpack.c.bf16 %v1339_v53, %v1202_v42  ;;  %v1799_v0 = vpop.f32.mrb[15].mxu0 }
 0x387   : > { %1801 = vmatpush3.bf16.msra.mxu1 %v1343_v56 }
 0x38a   : > { %1803 = vmatmul.mubr.msk.bf16.vlgmr.msra.gmra.mrb[8].mxu1 %vm322_vm1, %v1947_v59 }
 0x45d   : > { %v1386_v5 = vpop.f32.mrb[8].mxu1 }
 0x45e   : > { %1393 = vst.msk [vmem:[%s291_s10] sm:$0xff] %vm493_vm2, %v1386_v5  ;;  %v1804_v62 = vpop.f32.mrb[9].mxu1 }
 0x45f   : > { %v1389_v41 = vpop.f32.mrb[10].mxu1 }
 0x460   : > { %1394 = vst.msk [vmem:[%s291_s10 + $0x8] sm:$0xff] %vm493_vm2, %v1389_v41  ;;  %v1805_v44 = vpop.f32.mrb[11].mxu1 }
 0x461 PF: > { %s16_s21 = sadd.s32 1, %s1962_s21  }
 0x462   : > { %p13_p4 = scmp.ge.s32.totalorder %s16_s21, 4  }
 0x464   :  { %15 = sbr.rel (!%p13_p4) target bundleno = 1 (0x1), region = 80 }

</bundles_post_ra>
